<compile_context>
chip_gen: v7x
topology: tpu7x:2x2x1
jax: 0.10.0
libtpu: 0.0.40
codegen_flags: <defaults>
</compile_context>

<pallas_src>
import functools

import jax
import jax.numpy as jnp
from jax.experimental import pallas as pl
from jax.experimental.pallas import tpu as pltpu


# ---- model hyper-parameters (small, consistent with the module) -------------
B = 2          # batch
S = 8          # seq_len
D_MODEL = 32   # d_model
D_FF = 64      # d_ff


def ffn_kernel(x_ref, w1_ref, w2_ref, bias_ref, o_ref):
    """x_ref: (TM, d_model) bf16 tile; w1: (d_model, d_ff) bf16 (resident);
    w2: (d_ff, d_model) bf16 (resident); bias_ref: (2, max(d_ff, d_model)) f32
    slab (resident) -> row 0[:d_ff] = b1, row 1[:d_model] = b2."""
    d_ff = w1_ref.shape[-1]
    d_model = w2_ref.shape[-1]

    b1 = bias_ref[0:1, :d_ff]          # (1, d_ff)    f32, lane-broadcast add
    b2 = bias_ref[1:2, :d_model]       # (1, d_model) f32, lane-broadcast add

    # linear1 (bf16 MXU, f32 accumulate) + bias + ReLU (f32 VPU epilogue)
    h = jnp.dot(x_ref[...], w1_ref[...],
                preferred_element_type=jnp.float32) + b1
    h = jnp.maximum(h, 0.0)

    # dropout == identity (eval mode)

    # linear2 (bf16 MXU, f32 accumulate) + bias
    y = jnp.dot(h.astype(jnp.bfloat16), w2_ref[...],
                preferred_element_type=jnp.float32) + b2

    o_ref[...] = y.astype(o_ref.dtype)


def pack_ffn_params(w1, b1, w2, b2):
    """One-time parameter setup: cast weights to bf16 for the MXU and pack the
    two tiny bias vectors into a single lane-aligned f32 slab (one DMA)."""
    d_model, d_ff = w1.shape
    slab_w = max(d_ff, d_model)
    bias_slab = jnp.zeros((2, slab_w), jnp.float32)
    bias_slab = bias_slab.at[0, :d_ff].set(b1.astype(jnp.float32))
    bias_slab = bias_slab.at[1, :d_model].set(b2.astype(jnp.float32))
    return (w1.astype(jnp.bfloat16), w2.astype(jnp.bfloat16), bias_slab)


@functools.partial(jax.jit, static_argnames=("block_rows",))
def position_wise_feed_forward(x, params, *, block_rows=256):
    """x: (..., d_model).  params = pack_ffn_params(w1, b1, w2, b2)."""
    w1_bf, w2_bf, bias_slab = params
    d_model, d_ff = w1_bf.shape
    slab_w = bias_slab.shape[-1]

    orig_shape = x.shape
    # Fold all leading dims (batch, seq) into the row / sublane axis.
    x2d = x.reshape(-1, d_model)
    n = x2d.shape[0]

    # Row tile: multiple of 8 sublanes; collapses to the full array for tiny N.
    tm = n if n <= block_rows else block_rows
    grid = (pl.cdiv(n, tm),)

    cost = pl.CostEstimate(
        flops=4 * n * d_model * d_ff,                       # two matmuls
        bytes_accessed=(x2d.size * 2 + w1_bf.size * 2 + w2_bf.size * 2
                        + bias_slab.size * 4 + n * d_model * 4),
        transcendentals=0,
    )

    out2d = pl.pallas_call(
        ffn_kernel,
        out_shape=jax.ShapeDtypeStruct((n, d_model), x.dtype),
        grid=grid,
        in_specs=[
            pl.BlockSpec((tm, d_model), lambda i: (i, 0)),      # x tile
            pl.BlockSpec((d_model, d_ff), lambda i: (0, 0)),    # w1 resident
            pl.BlockSpec((d_ff, d_model), lambda i: (0, 0)),    # w2 resident
            pl.BlockSpec((2, slab_w), lambda i: (0, 0)),        # biases resident
        ],
        out_specs=pl.BlockSpec((tm, d_model), lambda i: (i, 0)),
        compiler_params=pltpu.CompilerParams(
            dimension_semantics=("parallel",)),                  # v7x megacore
        cost_estimate=cost,
    )(x2d.astype(jnp.bfloat16), w1_bf, w2_bf, bias_slab)

    return out2d.reshape(orig_shape)


# ---------------- pure-JAX references (for correctness check) ----------------
def ffn_ref_bf16(x, w1, b1, w2, b2):
    """Mirrors the kernel numerics: bf16 operands, f32 accumulate/epilogue."""
    xb = x.astype(jnp.bfloat16).astype(jnp.float32)
    w1b = w1.astype(jnp.bfloat16).astype(jnp.float32)
    w2b = w2.astype(jnp.bfloat16).astype(jnp.float32)
    h = jnp.maximum(xb @ w1b + b1, 0.0)
    hb = h.astype(jnp.bfloat16).astype(jnp.float32)
    return hb @ w2b + b2


def ffn_ref_f32(x, w1, b1, w2, b2):
    h = jnp.maximum(x @ w1 + b1, 0.0)      # dropout == identity (eval mode)
    return h @ w2 + b2


if __name__ == "__main__":
    key = jax.random.PRNGKey(0)
    kx, k1, k2, k3, k4, kx2 = jax.random.split(key, 6)

    x = jax.random.normal(kx, (B, S, D_MODEL), jnp.float32)
    scale = 0.05
    w1 = scale * jax.random.normal(k1, (D_MODEL, D_FF), jnp.float32)
    b1 = scale * jax.random.normal(k2, (D_FF,), jnp.float32)
    w2 = scale * jax.random.normal(k3, (D_FF, D_MODEL), jnp.float32)
    b2 = scale * jax.random.normal(k4, (D_MODEL,), jnp.float32)

    params = pack_ffn_params(w1, b1, w2, b2)   # one-time setup (hoisted)

    # Case 1: tiny shape from the module spec (grid collapses to 1 step).
    out = jax.block_until_ready(position_wise_feed_forward(x, params))
    assert out.shape == (B, S, D_MODEL)
    ref = ffn_ref_bf16(x, w1, b1, w2, b2)
    assert jnp.allclose(out, ref, atol=1e-4, rtol=1e-4), (
        f"max abs err {jnp.max(jnp.abs(out - ref))}")
    # Coarse check vs the full-f32 reference (bf16 operand rounding only).
    ref32 = ffn_ref_f32(x, w1, b1, w2, b2)
    assert jnp.allclose(out, ref32, atol=5e-2, rtol=5e-2), (
        f"max abs err vs f32 ref {jnp.max(jnp.abs(out - ref32))}")

    # Case 2: more tokens -> exercises the multi-step row grid with resident
    # weights (N = 512 rows, block_rows = 256 -> grid = (2,)).
    x_big = jax.random.normal(kx2, (4, 128, D_MODEL), jnp.float32)
    out_big = jax.block_until_ready(position_wise_feed_forward(x_big, params))
    ref_big = ffn_ref_bf16(x_big, w1, b1, w2, b2)
    assert out_big.shape == x_big.shape
    assert jnp.allclose(out_big, ref_big, atol=1e-4, rtol=1e-4), (
        f"max abs err {jnp.max(jnp.abs(out_big - ref_big))}")

    print("KERNEL_OK")
</pallas_src>

<mosaic_0001>
module attributes {stable_mosaic.version = 11 : i64} {
  func.func @ffn_kernel(%arg0: i32, %arg1: memref<16x32xbf16, #tpu.memory_space<vmem>>, %arg2: memref<32x64xbf16, #tpu.memory_space<vmem>>, %arg3: memref<64x32xbf16, #tpu.memory_space<vmem>>, %arg4: memref<2x64xf32, #tpu.memory_space<vmem>>, %arg5: memref<16x32xf32, #tpu.memory_space<vmem>>) attributes {dimension_semantics = [#tpu.dimension_semantics<parallel>], iteration_bounds = array<i64: 1>, scalar_prefetch = 0 : i64, scratch_operands = 0 : i64, tpu.core_type = #tpu.core_type<tc>, window_params = [{transform_indices = @transform_0, window_bounds = array<i64: 16, 32>}, {pipeline_mode = #tpu.pipeline_mode<synchronous>, transform_indices = @transform_1, window_bounds = array<i64: 32, 64>}, {pipeline_mode = #tpu.pipeline_mode<synchronous>, transform_indices = @transform_2, window_bounds = array<i64: 64, 32>}, {pipeline_mode = #tpu.pipeline_mode<synchronous>, transform_indices = @transform_3, window_bounds = array<i64: 2, 64>}, {transform_indices = @transform_4, window_bounds = array<i64: 16, 32>}]} {
    %c0 = arith.constant 0 : index
    %c0_0 = arith.constant 0 : index
    %0 = vector.load %arg4[%c0, %c0_0] : memref<2x64xf32, #tpu.memory_space<vmem>>, vector<1x64xf32>
    %c1 = arith.constant 1 : index
    %c0_1 = arith.constant 0 : index
    %1 = vector.load %arg4[%c1, %c0_1] : memref<2x64xf32, #tpu.memory_space<vmem>>, vector<1x32xf32>
    %c0_2 = arith.constant 0 : index
    %c0_3 = arith.constant 0 : index
    %2 = vector.load %arg1[%c0_2, %c0_3] : memref<16x32xbf16, #tpu.memory_space<vmem>>, vector<16x32xbf16>
    %c0_4 = arith.constant 0 : index
    %c0_5 = arith.constant 0 : index
    %3 = vector.load %arg2[%c0_4, %c0_5] : memref<32x64xbf16, #tpu.memory_space<vmem>>, vector<32x64xbf16>
    %cst = arith.constant dense<0.000000e+00> : vector<16x64xf32>
    %4 = tpu.matmul %2, %3, %cst {dimension_numbers = #tpu.dot_dimension_numbers<[1], [0], [0], [1], [0, 0, 1, 1], [], []>} : vector<16x32xbf16>, vector<32x64xbf16>, vector<16x64xf32> -> vector<16x64xf32>
    %5 = vector.broadcast %0 : vector<1x64xf32> to vector<16x64xf32>
    %6 = arith.addf %4, %5 : vector<16x64xf32>
    %cst_6 = arith.constant 0.000000e+00 : f32
    %7 = vector.broadcast %cst_6 : f32 to vector<16x64xf32>
    %8 = arith.maximumf %6, %7 : vector<16x64xf32>
    %9 = arith.truncf %8 : vector<16x64xf32> to vector<16x64xbf16>
    %c0_7 = arith.constant 0 : index
    %c0_8 = arith.constant 0 : index
    %10 = vector.load %arg3[%c0_7, %c0_8] : memref<64x32xbf16, #tpu.memory_space<vmem>>, vector<64x32xbf16>
    %cst_9 = arith.constant dense<0.000000e+00> : vector<16x32xf32>
    %11 = tpu.matmul %9, %10, %cst_9 {dimension_numbers = #tpu.dot_dimension_numbers<[1], [0], [0], [1], [0, 0, 1, 1], [], []>} : vector<16x64xbf16>, vector<64x32xbf16>, vector<16x32xf32> -> vector<16x32xf32>
    %12 = vector.broadcast %1 : vector<1x32xf32> to vector<16x32xf32>
    %13 = arith.addf %11, %12 : vector<16x32xf32>
    %c0_10 = arith.constant 0 : index
    %c0_11 = arith.constant 0 : index
    %14 = vector.load %arg5[%c0_10, %c0_11] : memref<16x32xf32, #tpu.memory_space<vmem>>, vector<16x32xf32>
    tpu.vector_store %arg5[%c0_10, %c0_11], %13 {strides = array<i32>} : memref<16x32xf32, #tpu.memory_space<vmem>>, vector<16x32xf32>,
    return
  }
  func.func @transform_0(%arg0: i32) -> (i32, i32) {
    %c0_i32 = arith.constant 0 : i32
    %c0_i32_0 = arith.constant 0 : i32
    return %arg0, %c0_i32 : i32, i32
  }
  func.func @transform_1(%arg0: i32) -> (i32, i32) {
    %c0_i32 = arith.constant 0 : i32
    %c0_i32_0 = arith.constant 0 : i32
    %c0_i32_1 = arith.constant 0 : i32
    return %c0_i32, %c0_i32_0 : i32, i32
  }
  func.func @transform_2(%arg0: i32) -> (i32, i32) {
    %c0_i32 = arith.constant 0 : i32
    %c0_i32_0 = arith.constant 0 : i32
    %c0_i32_1 = arith.constant 0 : i32
    return %c0_i32, %c0_i32_0 : i32, i32
  }
  func.func @transform_3(%arg0: i32) -> (i32, i32) {
    %c0_i32 = arith.constant 0 : i32
    %c0_i32_0 = arith.constant 0 : i32
    %c0_i32_1 = arith.constant 0 : i32
    return %c0_i32, %c0_i32_0 : i32, i32
  }
  func.func @transform_4(%arg0: i32) -> (i32, i32) {
    %c0_i32 = arith.constant 0 : i32
    %c0_i32_0 = arith.constant 0 : i32
    return %arg0, %c0_i32 : i32, i32
  }
}

</mosaic_0001>

<bundles_post_ra>
// kernel: position_wise_feed_forward.1
= control target key start
LH: loop header
LB: loop body
LE: loop exit
PB: predicated region body
PF: predicated region fallthrough
CT: control target
= control target key end

     0   :  { %v270_v1 = vmov 0.0   ;;  %vm271_vm0 = vmmov 0   ;;  %vm48_vm1 = vcmask 261120   ;;  %s342_s0 = inlined_call_operand.vmem [shape: bf16[16,32], index: 0, kind: input, shape index: {}]   ;;  %s343_s1 = inlined_call_operand.vmem [shape: bf16[32,64], index: 1, kind: input, shape index: {}]   ;;  %s344_s2 = inlined_call_operand.vmem [shape: bf16[64,32], index: 2, kind: input, shape index: {}]   ;;  %s345_s3 = inlined_call_operand.vmem [shape: f32[2,64], index: 3, kind: input, shape index: {}]   ;;  %s346_s4 = inlined_call_operand.hbm [shape: f32[16,32], index: 4, kind: output, shape index: {}]  }
   0x1   :  { %v239_v0 = vld [vmem:[%s343_s1] sm:$0xff]   ;;  %214 = vmatprep.subr.bf16.mxu0 %v270_v1  ;;  %222 = vmatprep.subr.bf16.mxu1 %v270_v1  ;;  %v240_v2 = vld [vmem:[%s343_s1 + $0x8] sm:$0xff]  }
   0x2   :  { %215 = vmatpush3.bf16.msra.mxu0 %v239_v0  ;;  %218 = vmatprep.mubr.msk.bf16.mxu0 %vm271_vm0, %v270_v1  ;;  %v242_v3 = vld [vmem:[%s344_s2] sm:$0xff]   ;;  %v243_v5 = vld [vmem:[%s344_s2 + $0x8] sm:$0xff]  }
   0x3   :  { %216 = vmatprep.subr.bf16.mxu0 %v270_v1  ;;  %230 = vmatprep.mubr.msk.bf16.mxu1 %vm271_vm0, %v270_v1  ;;  %v241_v4 = vld [vmem:[%s342_s0] sm:$0xff]  }
   0x4   :  { %223 = vmatpush3.bf16.msra.mxu1 %v242_v3 }
   0x5   :  { %224 = vmatprep.subr.bf16.mxu1 %v270_v1 }
   0x6   :  { %217 = vmatpush3.bf16.msra.mxu0 %v240_v2 }
   0x7   :  { %9 = vsyncpa [#allocation3], 0  ;;  %v244_v6 = vld [vmem:[%s344_s2 + $0x10] sm:$0xff]   ;;  %v245_v7 = vld [vmem:[%s344_s2 + $0x18] sm:$0xff]   ;;  %vm132_vm2 = vcmask 523264   ;;  %s272_s2 = smov [#allocation2]  }
   0x8   :  { %225 = vmatpush3.bf16.msra.mxu1 %v243_v5  ;;  %v195_v8 = vld [vmem:[%s345_s3] ss:$0 sm:$0xff]  ;;  %v200_v18 = vld [vmem:[%s345_s3 + $0x1] ss:$0 sm:$0xff]  ;;  %s184_s5 = sshll.u32 %s272_s2, 4  ;;  %s185_s5 = int_to_ptr.vmem [resolvable:$true] %s184_s5 }
   0x9   :  { %219 = vmatmul.mubr.msk.bf16.vlgmr.msra.gmra.mrb[0].mxu0 %vm48_vm1, %v241_v4  ;;  %226 = vmatprep.subr.bf16.mxu1 %v270_v1  ;;  %s246_s6 = scalar_lea.vmem %s185_s5, 256  ;;  %p251_p1 = scmp.lt.s32.totalorder %s185_s5, %s185_s5 }
   0xa   :  { %p247_p0 = scmp.ne.s32.totalorder %s185_s5, %s246_s6  ;;  %p252_p2 = scmp.lt.s32.totalorder %s246_s6, %s246_s6 }
   0xc   :  { %227 = vmatpush3.bf16.msra.mxu1 %v244_v6  ;;  %p253_p3 = por %p252_p2, %p251_p1 }
   0xd   :  { %228 = vmatprep.subr.bf16.mxu1 %v270_v1 }
   0xe   :  { %p254_p4 = pnand %p253_p3, %p247_p0 }
  0x10   :  { %229 = vmatpush3.bf16.msra.mxu1 %v245_v7 }
  0xdc   :  { %v86_v9 = vpop.f32.mrb[0].mxu0 }
  0xdd   :  { %v87_v10 = vadd.f32 %v195_v8, %v86_v9  ;;  %v220_v11 = vpop.f32.mrb[1].mxu0 }
  0xde   :  { %v89_v12 = vpop.f32.mrb[2].mxu0 }
  0xdf   :  { %v90_v13 = vadd.f32 %v195_v8, %v89_v12  ;;  %v221_v14 = vpop.f32.mrb[3].mxu0  ;;  %v93_v15 = vmax.f32 %v87_v10, 0.0 }
  0xe1   :  { %v94_v16 = vmax.f32 %v90_v13, 0.0 }
  0xe3   :  { %v95_v17 = vpack.c.bf16 %v94_v16, %v93_v15 }
  0xe5   :  { %231 = vmatmul.mubr.msk.bf16.vlgmr.msra.gmra.mrb[0].mxu1 %vm132_vm2, %v95_v17 }
 0x1b8   :  { %v170_v19 = vpop.f32.mrb[0].mxu1 }
 0x1b9   :  { %v171_v20 = vadd.f32 %v200_v18, %v170_v19  ;;  %v232_v21 = vpop.f32.mrb[1].mxu1 }
 0x1ba   :  { %v173_v22 = vpop.f32.mrb[2].mxu1 }
 0x1bb   :  { %177 = vst.msk [vmem:[#allocation2] sm:$0xff] %vm48_vm1, %v171_v20  ;;  %v174_v23 = vadd.f32 %v200_v18, %v173_v22  ;;  %v233_v24 = vpop.f32.mrb[3].mxu1 }
 0x1bd   :  { %178 = vst.msk [vmem:[#allocation2 + $0x8] sm:$0xff] %vm48_vm1, %v174_v23 }
 0x1be   :  { %257 = shalt.err (!%p254_p4)
}
 0x1bf   :  { %s258_s8 = scalar_lea.hbm %s346_s4, 256 }
 0x1c0   :  { %p259_p5 = scmp.ne.s32.totalorder %s346_s4, %s258_s8  ;;  %p262_p6 = scmp.lt.u32.totalorder %s258_s8, %s346_s4 }
 0x1c2   :  { %p264_p7 = pnand %p262_p6, %p259_p5 }
 0x1c4   :  { %267 = shalt.err (!%p264_p7)
}
 0x1c5   :  { %s273_s13 = smov 128   ;;  %s274_s14 = smov 8  }
 0x1c6   :  { %190 = dma.vmem_to_hbm [thread:$0]  %s185_s5, 256, %s346_s4, [#allocation3], %s273_s13, %s273_s13, %s274_s14  }
 0x1c7   :  { %268 = dma.done.wait [#allocation3], 256  }
 0x1c8   :  { %269 = vsyncadd [#allocation3], 4294967040 }
 0x1c9   :  { %194 = vsyncpa [#allocation3], 1 }

</bundles_post_ra>
